<compile_context>
chip_gen: v5e
topology: v5e:2x2
jax: 0.10.0
libtpu: 0.0.40
codegen_flags: <defaults>
</compile_context>

<pallas_src>
import jax
import jax.numpy as jnp
import numpy as np
from jax.experimental import pallas as pl
from jax.experimental.pallas import tpu as pltpu

# ---------------- synthetic config (small, consistent with the module) -------
L_LABEL_NODE_HIDDEN = 7            # global_config.l_label_node_hidden
L_LABEL_EDGE_HIDDEN = 7            # global_config.l_label_edge_hidden
NODE_HIDDEN = 32                   # model_config.node_hidden
EDGE_HIDDEN = 32                   # model_config.edge_hidden
INNER = EDGE_HIDDEN // 2           # SequenceToPair inner dim
NODE_IN = L_LABEL_NODE_HIDDEN + 1  # after F.pad(..., (0, 1))
EDGE_IN = L_LABEL_EDGE_HIDDEN + 1
EDGE_OUT = L_LABEL_EDGE_HIDDEN
QKD = 2 * INNER + EDGE_HIDDEN      # packed node output: [q | k | (q-k)@Wo_diff]

NEG_SLOPE = 0.01                   # torch.nn.LeakyReLU default
LN_EPS = 1e-5                      # torch.nn.LayerNorm default
F32 = jnp.float32


def _leaky(x):
    return jnp.where(x > 0, x, NEG_SLOPE * x)


def _ln(x, g, b):
    mu = jnp.mean(x, axis=-1, keepdims=True)
    var = jnp.mean((x - mu) ** 2, axis=-1, keepdims=True)
    return (x - mu) * jax.lax.rsqrt(var + LN_EPS) * g + b


# ---------------------------- node-path kernel --------------------------------
def node_kernel(x_ref, wn_ref, bn_ref, g_ref, be_ref, wp_ref, bp_ref, wob_ref,
                qkd_ref):
    x = x_ref[0]                                                   # (L, NODE_IN)
    h = jnp.dot(x, wn_ref[...], preferred_element_type=F32) + bn_ref[...]
    h = _leaky(h)                                                  # node embed
    s = _ln(h, g_ref[...], be_ref[...])                            # S2P layernorm
    p = jnp.dot(s, wp_ref[...], preferred_element_type=F32) + bp_ref[...]
    q = p[:, :INNER]
    k = p[:, INNER:]
    # hoisted "diff" half of SequenceToPair: d = (q - k) @ Wo[INNER:, :]
    d = jnp.dot(q - k, wob_ref[...], preferred_element_type=F32)   # (L, 32)
    qkd_ref[0] = jnp.concatenate([p, d], axis=-1)                  # (L, 64)


# ---------------------------- edge-path kernel ---------------------------------
def edge_kernel(e_ij_ref, e_ji_ref, qkd_i_ref, qkd_j_ref,
                wslab_ref, vslab_ref, wh2_ref, bh2_ref, out_ref):
    ti = e_ij_ref.shape[1]
    tj = e_ij_ref.shape[2]
    n = ti * tj

    # -- unpack packed parameters (static sublane slices) -----------------------
    wslab = wslab_ref[...]                                  # (8+16+32, 32)
    we = wslab[0:EDGE_IN, :]                                # edge embed
    wo_a = wslab[EDGE_IN:EDGE_IN + INNER, :]                # "prod" half of o_proj
    wh1 = wslab[EDGE_IN + INNER:, :]                        # head Linear 1
    v = vslab_ref[...]                                      # (7, 32)
    be = v[0:1, :]
    bo = v[1:2, :]
    g1 = v[2:3, :]
    b1 = v[3:4, :]
    bh1 = v[4:5, :]
    g2 = v[5:6, :]
    b2 = v[6:7, :]

    # -- edge embedding, both orientations, in 2-D (n, C) form ------------------
    x_ij = e_ij_ref[0].reshape(n, EDGE_IN)                  # edge[b, i, j]
    x_ji = e_ji_ref[0].reshape(n, EDGE_IN)                  # edge[b, j, i] (pre-T)
    h_ij = _leaky(jnp.dot(x_ij, we, preferred_element_type=F32) + be)
    h_ji = _leaky(jnp.dot(x_ji, we, preferred_element_type=F32) + be)

    # -- SequenceToPair symmetric sum (diff half hoisted to the node pass) ------
    qkd_i = qkd_i_ref[0]                                    # (ti, 64)
    qkd_j = qkd_j_ref[0]                                    # (tj, 64)
    q_i = qkd_i[:, :INNER]
    k_i = qkd_i[:, INNER:2 * INNER]
    d_i = qkd_i[:, 2 * INNER:]
    q_j = qkd_j[:, :INNER]
    k_j = qkd_j[:, INNER:2 * INNER]
    d_j = qkd_j[:, 2 * INNER:]

    # s2p[i,j] + s2p[j,i] = (q_j*k_i + q_i*k_j) @ Wo_prod + d_i + d_j + 2*bo
    prod = (q_j[None, :, :] * k_i[:, None, :]
            + q_i[:, None, :] * k_j[None, :, :]).reshape(n, INNER)
    s2p_sum = jnp.dot(prod, wo_a, preferred_element_type=F32)
    dd = (d_i[:, None, :] + d_j[None, :, :]).reshape(n, EDGE_HIDDEN)

    # edge = (edge_sum[i,j] + edge_sum[j,i]) / 2
    sym = 0.5 * (h_ij + h_ji + s2p_sum + dd) + bo           # (n, 32)

    # -- l_masked_bond_pred_layer: LN -> Linear -> LeakyReLU -> LN -> Linear ----
    h = _ln(sym, g1, b1)
    h = _leaky(jnp.dot(h, wh1, preferred_element_type=F32) + bh1)
    h = _ln(h, g2, b2)
    h = jnp.dot(h, wh2_ref[...], preferred_element_type=F32) + bh2_ref[...]
    out_ref[0] = h.reshape(ti, tj, EDGE_OUT)


# ------------------------------- wrapper ---------------------------------------
def _pick_tile(t, L):
    t = min(t, L)
    if (L % t != 0) or (t != L and t % 8 != 0):
        t = L
    return t


def ppl_pred(params, l_x_init, l_edge_single_masked_init, l_mask=None,
             ti=64, tj=64, vmem_limit_bytes=48 * 1024 * 1024):
    p = params
    B, L, _ = l_x_init.shape
    ti = _pick_tile(ti, L)
    tj = _pick_tile(tj, L)

    # train_ppl: x_init = F.pad(l_x_init, (0, 1), 'constant', 0)
    x_init = jnp.pad(l_x_init, ((0, 0), (0, 0), (0, 1))).astype(F32)

    def full(shape):
        return pl.BlockSpec(shape, lambda *_: (0,) * len(shape))

    wo_diff = p["Wo"][INNER:, :]   # hoisted "diff" half of o_proj (16, 32)

    # ---- node path: embed + S2P layernorm/projection + hoisted diff -> qkd
    qkd = pl.pallas_call(
        node_kernel,
        grid=(B,),
        in_specs=[
            pl.BlockSpec((1, L, NODE_IN), lambda b: (b, 0, 0)),
            full((NODE_IN, NODE_HIDDEN)), full((1, NODE_HIDDEN)),
            full((1, NODE_HIDDEN)), full((1, NODE_HIDDEN)),
            full((NODE_HIDDEN, 2 * INNER)), full((1, 2 * INNER)),
            full((INNER, EDGE_HIDDEN)),
        ],
        out_specs=pl.BlockSpec((1, L, QKD), lambda b: (b, 0, 0)),
        out_shape=jax.ShapeDtypeStruct((B, L, QKD), F32),
        compiler_params=pltpu.CompilerParams(dimension_semantics=("parallel",)),
    )(x_init, p["Wn"], p["bn"], p["s2p_g"], p["s2p_b"], p["Wp"], p["bp"], wo_diff)

    # TODO(synk): GNNBlock stack (n_block blocks, uses l_mask/chunk_size) not
    # defined in the provided source -> treated as identity here.

    edge = l_edge_single_masked_init.astype(F32)
    # TODO(synk): the (j,i)-oriented tile is fed via this XLA transpose copy; an
    # in-kernel XLU transpose would avoid the extra HBM array but is kept out
    # for lowering safety (the kernel is MXU-bound, so this costs only a few %).
    edge_t = jnp.swapaxes(edge, 1, 2)

    # packed edge-kernel parameters: one weight slab + one bias/gain slab
    wslab = jnp.concatenate([p["We"], p["Wo"][:INNER, :], p["Wh1"]], axis=0)
    vslab = jnp.concatenate([p["be"], p["bo"], p["g1"], p["b1"],
                             p["bh1"], p["g2"], p["b2"]], axis=0)

    # grid ordered (i, j, b) so leading parallel axes feed both v7x TensorCores
    grid = (L // ti, L // tj, B)
    pred = pl.pallas_call(
        edge_kernel,
        grid=grid,
        in_specs=[
            pl.BlockSpec((1, ti, tj, EDGE_IN), lambda i, j, b: (b, i, j, 0)),  # edge[i,j]
            pl.BlockSpec((1, ti, tj, EDGE_IN), lambda i, j, b: (b, i, j, 0)),  # edge[j,i] (pre-T)
            pl.BlockSpec((1, ti, QKD), lambda i, j, b: (b, i, 0)),             # q/k/d at i
            pl.BlockSpec((1, tj, QKD), lambda i, j, b: (b, j, 0)),             # q/k/d at j
            full((EDGE_IN + INNER + EDGE_HIDDEN, EDGE_HIDDEN)),                # weight slab
            full((7, EDGE_HIDDEN)),                                            # bias/gain slab
            full((EDGE_HIDDEN, EDGE_OUT)), full((1, EDGE_OUT)),                # head out
        ],
        out_specs=pl.BlockSpec((1, ti, tj, EDGE_OUT),
                               lambda i, j, b: (b, i, j, 0)),
        out_shape=jax.ShapeDtypeStruct((B, L, L, EDGE_OUT), F32),
        compiler_params=pltpu.CompilerParams(
            dimension_semantics=("parallel", "parallel", "parallel"),
            vmem_limit_bytes=vmem_limit_bytes),
    )(edge, edge_t, qkd, qkd, wslab, vslab, p["Wh2"], p["bh2"])
    return pred


# --------------------------- deterministic params ------------------------------
def init_params(key):
    ks = jax.random.split(key, 12)
    w = lambda k, s: (0.1 * jax.random.normal(k, s)).astype(F32)
    p = {
        "Wn": w(ks[0], (NODE_IN, NODE_HIDDEN)),   "bn": w(ks[1], (1, NODE_HIDDEN)),
        "We": w(ks[2], (EDGE_IN, EDGE_HIDDEN)),   "be": w(ks[3], (1, EDGE_HIDDEN)),
        "s2p_g": jnp.ones((1, NODE_HIDDEN), F32), "s2p_b": jnp.zeros((1, NODE_HIDDEN), F32),
        "Wp": w(ks[4], (NODE_HIDDEN, 2 * INNER)), "bp": w(ks[5], (1, 2 * INNER)),
        "Wo": w(ks[6], (2 * INNER, EDGE_HIDDEN)), "bo": w(ks[7], (1, EDGE_HIDDEN)),
        "g1": jnp.ones((1, EDGE_HIDDEN), F32),    "b1": jnp.zeros((1, EDGE_HIDDEN), F32),
        "Wh1": w(ks[8], (EDGE_HIDDEN, EDGE_HIDDEN)), "bh1": w(ks[9], (1, EDGE_HIDDEN)),
        "g2": jnp.ones((1, EDGE_HIDDEN), F32),    "b2": jnp.zeros((1, EDGE_HIDDEN), F32),
        "Wh2": w(ks[10], (EDGE_HIDDEN, EDGE_OUT)), "bh2": w(ks[11], (1, EDGE_OUT)),
    }
    return p


# ------------------------------ pure-JAX reference -----------------------------
def reference(p, l_x_init, edge_init):
    x_init = jnp.pad(l_x_init, ((0, 0), (0, 0), (0, 1))).astype(F32)
    x = _leaky(x_init @ p["Wn"] + p["bn"])
    # (GNN blocks skipped — identity)
    s = _ln(x, p["s2p_g"], p["s2p_b"])
    proj = s @ p["Wp"] + p["bp"]
    q, k = proj[..., :INNER], proj[..., INNER:]
    e = _leaky(edge_init @ p["We"] + p["be"])
    prod = q[:, None, :, :] * k[:, :, None, :]
    diff = q[:, None, :, :] - k[:, :, None, :]
    s2p = jnp.concatenate([prod, diff], -1) @ p["Wo"] + p["bo"]
    edge = e + s2p
    edge = (edge + jnp.swapaxes(edge, 1, 2)) / 2
    h = _ln(edge, p["g1"], p["b1"]) @ p["Wh1"] + p["bh1"]
    h = _leaky(h)
    h = _ln(h, p["g2"], p["b2"]) @ p["Wh2"] + p["bh2"]
    return h


if __name__ == "__main__":
    key = jax.random.PRNGKey(0)
    kx, ke, kp = jax.random.split(key, 3)
    B, L = 2, 16
    l_x_init = jax.random.normal(kx, (B, L, L_LABEL_NODE_HIDDEN), F32)
    l_edge_single_masked_init = jax.random.normal(ke, (B, L, L, EDGE_IN), F32)
    l_mask = jnp.ones((B, L), F32)
    params = init_params(kp)

    pred = ppl_pred(params, l_x_init, l_edge_single_masked_init, l_mask)
    pred = jax.block_until_ready(pred)
    assert pred.shape == (B, L, L, EDGE_OUT)

    ref = reference(params, l_x_init, l_edge_single_masked_init)
    np.testing.assert_allclose(np.asarray(pred), np.asarray(ref),
                               rtol=2e-4, atol=2e-4)
    print("KERNEL_OK")
</pallas_src>

<mosaic_0001>
module attributes {stable_mosaic.version = 11 : i64} {
  func.func @node_kernel(%arg0: i32, %arg1: memref<1x16x8xf32, #tpu.memory_space<vmem>>, %arg2: memref<8x32xf32, #tpu.memory_space<vmem>>, %arg3: memref<1x32xf32, #tpu.memory_space<vmem>>, %arg4: memref<1x32xf32, #tpu.memory_space<vmem>>, %arg5: memref<1x32xf32, #tpu.memory_space<vmem>>, %arg6: memref<32x32xf32, #tpu.memory_space<vmem>>, %arg7: memref<1x32xf32, #tpu.memory_space<vmem>>, %arg8: memref<16x32xf32, #tpu.memory_space<vmem>>, %arg9: memref<1x16x64xf32, #tpu.memory_space<vmem>>) attributes {dimension_semantics = [#tpu.dimension_semantics<parallel>], iteration_bounds = array<i64: 2>, scalar_prefetch = 0 : i64, scratch_operands = 0 : i64, tpu.core_type = #tpu.core_type<tc>, window_params = [{transform_indices = @transform_0, window_bounds = array<i64: 1, 16, 8>}, {pipeline_mode = #tpu.pipeline_mode<synchronous>, transform_indices = @transform_1, window_bounds = array<i64: 8, 32>}, {pipeline_mode = #tpu.pipeline_mode<synchronous>, transform_indices = @transform_2, window_bounds = array<i64: 1, 32>}, {pipeline_mode = #tpu.pipeline_mode<synchronous>, transform_indices = @transform_3, window_bounds = array<i64: 1, 32>}, {pipeline_mode = #tpu.pipeline_mode<synchronous>, transform_indices = @transform_4, window_bounds = array<i64: 1, 32>}, {pipeline_mode = #tpu.pipeline_mode<synchronous>, transform_indices = @transform_5, window_bounds = array<i64: 32, 32>}, {pipeline_mode = #tpu.pipeline_mode<synchronous>, transform_indices = @transform_6, window_bounds = array<i64: 1, 32>}, {pipeline_mode = #tpu.pipeline_mode<synchronous>, transform_indices = @transform_7, window_bounds = array<i64: 16, 32>}, {transform_indices = @transform_8, window_bounds = array<i64: 1, 16, 64>}]} {
    %c0 = arith.constant 0 : index
    %c0_0 = arith.constant 0 : index
    %c0_1 = arith.constant 0 : index
    %0 = vector.load %arg1[%c0, %c0_0, %c0_1] : memref<1x16x8xf32, #tpu.memory_space<vmem>>, vector<1x16x8xf32>
    %1 = vector.shape_cast %0 : vector<1x16x8xf32> to vector<16x8xf32>
    %c0_2 = arith.constant 0 : index
    %c0_3 = arith.constant 0 : index
    %2 = vector.load %arg2[%c0_2, %c0_3] : memref<8x32xf32, #tpu.memory_space<vmem>>, vector<8x32xf32>
    %cst = arith.constant dense<0.000000e+00> : vector<16x32xf32>
    %3 = tpu.matmul %1, %2, %cst {dimension_numbers = #tpu.dot_dimension_numbers<[1], [0], [0], [1], [0, 0, 1, 1], [], []>} : vector<16x8xf32>, vector<8x32xf32>, vector<16x32xf32> -> vector<16x32xf32>
    %c0_4 = arith.constant 0 : index
    %c0_5 = arith.constant 0 : index
    %4 = vector.load %arg3[%c0_4, %c0_5] : memref<1x32xf32, #tpu.memory_space<vmem>>, vector<1x32xf32>
    %5 = vector.broadcast %4 : vector<1x32xf32> to vector<16x32xf32>
    %6 = arith.addf %3, %5 : vector<16x32xf32>
    %cst_6 = arith.constant 0.000000e+00 : f32
    %7 = vector.broadcast %cst_6 : f32 to vector<16x32xf32>
    %8 = arith.cmpf ogt, %6, %7 : vector<16x32xf32>
    %cst_7 = arith.constant 0.00999999977 : f32
    %9 = vector.broadcast %cst_7 : f32 to vector<16x32xf32>
    %10 = arith.mulf %9, %6 : vector<16x32xf32>
    %11 = arith.select %8, %6, %10 : vector<16x32xi1>, vector<16x32xf32>
    %c0_8 = arith.constant 0 : index
    %c0_9 = arith.constant 0 : index
    %12 = vector.load %arg4[%c0_8, %c0_9] : memref<1x32xf32, #tpu.memory_space<vmem>>, vector<1x32xf32>
    %c0_10 = arith.constant 0 : index
    %c0_11 = arith.constant 0 : index
    %13 = vector.load %arg5[%c0_10, %c0_11] : memref<1x32xf32, #tpu.memory_space<vmem>>, vector<1x32xf32>
    %cst_12 = arith.constant dense<0.000000e+00> : vector<16xf32>
    %14 = vector.multi_reduction <add>, %11, %cst_12 [1] : vector<16x32xf32> to vector<16xf32>
    %15 = vector.shape_cast %14 : vector<16xf32> to vector<16x1xf32>
    %cst_13 = arith.constant 3.200000e+01 : f32
    %16 = vector.broadcast %cst_13 : f32 to vector<16x1xf32>
    %17 = arith.divf %15, %16 : vector<16x1xf32>
    %18 = vector.broadcast %17 : vector<16x1xf32> to vector<16x32xf32>
    %19 = arith.subf %11, %18 : vector<16x32xf32>
    %20 = arith.mulf %19, %19 : vector<16x32xf32>
    %cst_14 = arith.constant dense<0.000000e+00> : vector<16xf32>
    %21 = vector.multi_reduction <add>, %20, %cst_14 [1] : vector<16x32xf32> to vector<16xf32>
    %22 = vector.shape_cast %21 : vector<16xf32> to vector<16x1xf32>
    %cst_15 = arith.constant 3.200000e+01 : f32
    %23 = vector.broadcast %cst_15 : f32 to vector<16x1xf32>
    %24 = arith.divf %22, %23 : vector<16x1xf32>
    %25 = vector.broadcast %17 : vector<16x1xf32> to vector<16x32xf32>
    %26 = arith.subf %11, %25 : vector<16x32xf32>
    %cst_16 = arith.constant 9.99999974E-6 : f32
    %27 = vector.broadcast %cst_16 : f32 to vector<16x1xf32>
    %28 = arith.addf %24, %27 : vector<16x1xf32>
    %29 = math.rsqrt %28 : vector<16x1xf32>
    %30 = vector.broadcast %29 : vector<16x1xf32> to vector<16x32xf32>
    %31 = arith.mulf %26, %30 : vector<16x32xf32>
    %32 = vector.broadcast %12 : vector<1x32xf32> to vector<16x32xf32>
    %33 = arith.mulf %31, %32 : vector<16x32xf32>
    %34 = vector.broadcast %13 : vector<1x32xf32> to vector<16x32xf32>
    %35 = arith.addf %33, %34 : vector<16x32xf32>
    %c0_17 = arith.constant 0 : index
    %c0_18 = arith.constant 0 : index
    %36 = vector.load %arg6[%c0_17, %c0_18] : memref<32x32xf32, #tpu.memory_space<vmem>>, vector<32x32xf32>
    %cst_19 = arith.constant dense<0.000000e+00> : vector<16x32xf32>
    %37 = tpu.matmul %35, %36, %cst_19 {dimension_numbers = #tpu.dot_dimension_numbers<[1], [0], [0], [1], [0, 0, 1, 1], [], []>} : vector<16x32xf32>, vector<32x32xf32>, vector<16x32xf32> -> vector<16x32xf32>
    %c0_20 = arith.constant 0 : index
    %c0_21 = arith.constant 0 : index
    %38 = vector.load %arg7[%c0_20, %c0_21] : memref<1x32xf32, #tpu.memory_space<vmem>>, vector<1x32xf32>
    %39 = vector.broadcast %38 : vector<1x32xf32> to vector<16x32xf32>
    %40 = arith.addf %37, %39 : vector<16x32xf32>
    %41 = vector.extract_strided_slice %40 {offsets = [0, 0], sizes = [16, 16], strides = [1, 1]} : vector<16x32xf32> to vector<16x16xf32>
    %42 = vector.extract_strided_slice %40 {offsets = [0, 16], sizes = [16, 16], strides = [1, 1]} : vector<16x32xf32> to vector<16x16xf32>
    %43 = arith.subf %41, %42 : vector<16x16xf32>
    %c0_22 = arith.constant 0 : index
    %c0_23 = arith.constant 0 : index
    %44 = vector.load %arg8[%c0_22, %c0_23] : memref<16x32xf32, #tpu.memory_space<vmem>>, vector<16x32xf32>
    %cst_24 = arith.constant dense<0.000000e+00> : vector<16x32xf32>
    %45 = tpu.matmul %43, %44, %cst_24 {dimension_numbers = #tpu.dot_dimension_numbers<[1], [0], [0], [1], [0, 0, 1, 1], [], []>} : vector<16x16xf32>, vector<16x32xf32>, vector<16x32xf32> -> vector<16x32xf32>
    %46 = tpu.concatenate %40, %45 in 1 : vector<16x32xf32>, vector<16x32xf32> -> vector<16x64xf32>
    %c0_25 = arith.constant 0 : index
    %c0_26 = arith.constant 0 : index
    %c0_27 = arith.constant 0 : index
    %47 = vector.load %arg9[%c0_25, %c0_26, %c0_27] : memref<1x16x64xf32, #tpu.memory_space<vmem>>, vector<1x16x64xf32>
    %48 = vector.shape_cast %47 : vector<1x16x64xf32> to vector<16x64xf32>
    %49 = vector.shape_cast %46 : vector<16x64xf32> to vector<1x16x64xf32>
    tpu.vector_store %arg9[%c0_25, %c0_26, %c0_27], %49 {strides = array<i32>} : memref<1x16x64xf32, #tpu.memory_space<vmem>>, vector<1x16x64xf32>,
    return
  }
  func.func @transform_0(%arg0: i32) -> (i32, i32, i32) {
    %c0_i32 = arith.constant 0 : i32
    %c0_i32_0 = arith.constant 0 : i32
    %c0_i32_1 = arith.constant 0 : i32
    return %arg0, %c0_i32, %c0_i32_0 : i32, i32, i32
  }
  func.func @transform_1(%arg0: i32) -> (i32, i32) {
    %c0_i32 = arith.constant 0 : i32
    %c0_i32_0 = arith.constant 0 : i32
    %c0_i32_1 = arith.constant 0 : i32
    return %c0_i32, %c0_i32_0 : i32, i32
  }
  func.func @transform_2(%arg0: i32) -> (i32, i32) {
    %c0_i32 = arith.constant 0 : i32
    %c0_i32_0 = arith.constant 0 : i32
    %c0_i32_1 = arith.constant 0 : i32
    return %c0_i32, %c0_i32_0 : i32, i32
  }
  func.func @transform_3(%arg0: i32) -> (i32, i32) {
    %c0_i32 = arith.constant 0 : i32
    %c0_i32_0 = arith.constant 0 : i32
    %c0_i32_1 = arith.constant 0 : i32
    return %c0_i32, %c0_i32_0 : i32, i32
  }
  func.func @transform_4(%arg0: i32) -> (i32, i32) {
    %c0_i32 = arith.constant 0 : i32
    %c0_i32_0 = arith.constant 0 : i32
    %c0_i32_1 = arith.constant 0 : i32
    return %c0_i32, %c0_i32_0 : i32, i32
  }
  func.func @transform_5(%arg0: i32) -> (i32, i32) {
    %c0_i32 = arith.constant 0 : i32
    %c0_i32_0 = arith.constant 0 : i32
    %c0_i32_1 = arith.constant 0 : i32
    return %c0_i32, %c0_i32_0 : i32, i32
  }
  func.func @transform_6(%arg0: i32) -> (i32, i32) {
    %c0_i32 = arith.constant 0 : i32
    %c0_i32_0 = arith.constant 0 : i32
    %c0_i32_1 = arith.constant 0 : i32
    return %c0_i32, %c0_i32_0 : i32, i32
  }
  func.func @transform_7(%arg0: i32) -> (i32, i32) {
    %c0_i32 = arith.constant 0 : i32
    %c0_i32_0 = arith.constant 0 : i32
    %c0_i32_1 = arith.constant 0 : i32
    return %c0_i32, %c0_i32_0 : i32, i32
  }
  func.func @transform_8(%arg0: i32) -> (i32, i32, i32) {
    %c0_i32 = arith.constant 0 : i32
    %c0_i32_0 = arith.constant 0 : i32
    %c0_i32_1 = arith.constant 0 : i32
    return %arg0, %c0_i32, %c0_i32_0 : i32, i32, i32
  }
}

</mosaic_0001>

<bundles_post_ra>
// kernel: tpu_custom_call.1
= control target key start
LH: loop header
LB: loop body
LE: loop exit
PB: predicated region body
PF: predicated region fallthrough
CT: control target
= control target key end

     0   :  { %13 = vsyncpa [#allocation3], 0  ;;  %s975_s0 = inlined_call_operand.vmem [shape: f32[2,16,8], index: 0, kind: input, shape index: {}]   ;;  %s976_s1 = inlined_call_operand.hbm [shape: f32[8,32], index: 1, kind: input, shape index: {}]   ;;  %s977_s2 = inlined_call_operand.vmem [shape: f32[1,32], index: 2, kind: input, shape index: {}]   ;;  %s978_s3 = inlined_call_operand.vmem [shape: f32[1,32], index: 3, kind: input, shape index: {}]   ;;  %s979_s4 = inlined_call_operand.vmem [shape: f32[1,32], index: 4, kind: input, shape index: {}]   ;;  %s980_s5 = inlined_call_operand.vmem [shape: f32[32,32], index: 5, kind: input, shape index: {}]   ;;  %s981_s6 = inlined_call_operand.vmem [shape: f32[1,32], index: 6, kind: input, shape index: {}]   ;;  %s982_s7 = inlined_call_operand.vmem [shape: f32[16,32], index: 7, kind: input, shape index: {}]   ;;  %s983_s8 = inlined_call_operand.hbm [shape: f32[2,16,64], index: 8, kind: output, shape index: {}]  }
   0x1   :  { %14 = vsyncpa [#allocation4], 0 }
   0x2   :  { %16 = vsyncpa [#allocation4 + $0x1], 0  ;;  %s848_s27 = smov 0   ;;  %s850_s28 = smov 0  }
   0x3   :  { %s852_s29 = smov 0   ;;  %s854_s30 = smov 0  }
   0x4 LB: > { %s869_s9 = sadd.s32 4294967295, %s795_s30   ;;  %s608_s10 = sadd.s32 4294967294, %s795_s30   ;;  %s795_s30 = sphi %s854_s30, %s989_s30   ;;  %s791_s29 = sphi %s852_s29, %s988_s29   ;;  %s787_s28 = sphi %s850_s28, %s987_s28   ;;  %s783_s27 = sphi %s848_s27, %s986_s27  }
   0x5   : > { %s873_s11 = sadd.s32 1, %s795_s30   ;;  %s202_s12 = sadd.s32 1, %s791_s29 }
   0x6   : > { %s199_s13 = ssub.s32 %s795_s30, %s873_s11  ;;  %p212_p0 = scmp.ne.s32.totalorder %s791_s29, %s787_s28 }
   0x7   : > { %p200_p1 = scmp.eq.s32.totalorder %s199_s13, 0  ;;  %p213_p2 = scmp.eq.s32.totalorder %s869_s9, 1 }
   0x8   : > { %p218_p3 = scmp.ne.s32.totalorder %s787_s28, %s783_s27  ;;  %p219_p4 = scmp.eq.s32.totalorder %s608_s10, 1 }
   0x9   : > { %s884_s14 = scalar_select %p200_p1, %s791_s29, %s202_s12  }
   0xa   : > { %p886_p5 = por %p213_p2, %p212_p0  ;;  %p890_p6 = por %p219_p4, %p218_p3 }
   0xb   : > { %p609_p7 = scmp.ge.s32.totalorder %s795_s30, 1  ;;  %p226_p8 = scmp.lt.s32.totalorder %s795_s30, 3 }
   0xc   : > { %p648_p9 = scmp.eq.s32.totalorder %s869_s9, 0  ;;  %s238_s19 = sshll.u32 %s976_s1, 4  ;;  %s239_s19 = int_to_ptr.hbm [resolvable:$true] %s238_s19 }
   0xd   : > { %p227_p10 = pnand %p609_p7, %p226_p8  ;;  %s797_s20 = smov [#allocation2]  }
   0xe   : > { %s240_s21 = sshll.u32 %s797_s20, 4  ;;  %s241_s21 = int_to_ptr.vmem [resolvable:$true] %s240_s21 }
   0xf   : > { %p640_p11 = pneg %p227_p10  ;;  %279 = sbr.rel (%p227_p10) target bundleno = 914 (0x392), region = 52 }
  0x11   : > { %p641_p12 = pnand %p648_p9, %p640_p11 }
  0x13   : > { %643 = dma.hbm_to_vmem [thread:$0]  (!%p641_p12), %s239_s19, 128, %s241_s21, [#allocation3]  }
  0x14   : > { %774 = dma.done.wait (%p648_p9), [#allocation3], 128  }
  0x15   : > { %776 = vsyncadd (%p648_p9), [#allocation3], 4294967168  ;;  %p314_p13 = scmp.lt.s32.totalorder %s869_s9, 1  ;;  %vm326_vm0 = vcmask 64512   ;;  %v321_v0 = vld [vmem:[#allocation2] sm:$0xff]  ;;  %vm364_vm2 = vcmask 261120  }
  0x16   : > { %348 = vmatpush.msra.mxu0 %v321_v0  ;;  %v689_v3 = vld [vmem:[%s977_s2] ss:$0 sm:$0xff]  ;;  %v798_v14 = vmov 32.0   ;;  %v429_v31 = vld [vmem:[%s980_s5 + $0x18] sm:$0xff]  ;;  %v428_v32 = vld [vmem:[%s980_s5 + $0x10] sm:$0xff]  ;;  %s799_s19 = smov 112  }
  0x17   : > { %s315_s22 = scalar_select %p314_p13, %s869_s9, 1  ;;  %693 = vrcp.f32 %v798_v14  ;;  %452 = vmatpush.msra.mxu1 %v429_v31  ;;  %630 = vmatpush.msra.mxu3 %v429_v31  ;;  %v427_v33 = vld [vmem:[%s980_s5 + $0x8] sm:$0xff]  ;;  %v426_v34 = vld [vmem:[%s980_s5] sm:$0xff]  ;;  %vm475_vm11 = vcmask 130048   ;;  %vm515_vm12 = vcmask 523264  }
  0x18   : > { %v690_v49 = vld [vmem:[%s978_s3] ss:$0 sm:$0xff]  ;;  %v474_v63 = vld [vmem:[%s982_s7 + $0x8] sm:$0xff] }
  0x19   : > { %s628_s23 = sshll.u32 %s315_s22, 4  ;;  %453 = vmatpush.msra.mxu1 %v428_v32  ;;  %631 = vmatpush.msra.mxu3 %v428_v32  ;;  %v691_v53 = vld [vmem:[%s979_s4] ss:$0 sm:$0xff]  ;;  %s800_s22 = smov 32  }
  0x1a   : > { %s318_s26 = scalar_lea.vmem %s975_s0, %s628_s23  ;;  %496 = vmatpush.msra.mxu2 %v474_v63  ;;  %v692_v0 = vld [vmem:[%s981_s6] ss:$0 sm:$0xff]  ;;  %s311_s23 = sand.u32 1, %s787_s28  }
  0x1b   : > { %v319_v1 = vld [vmem:[%s318_s26] sm:$0xff]  ;;  %v320_v2 = vld [vmem:[%s318_s26 + $0x8] sm:$0xff]  ;;  %454 = vmatpush.msra.mxu1 %v427_v33  ;;  %632 = vmatpush.msra.mxu3 %v427_v33  ;;  %s614_s24 = sshll.u32 %s311_s23, 4  ;;  %s629_s26 = sshll.u32 %s869_s9, 4 }
  0x1c   : > { %617 = vmatmul.msk.f32.vlgmr.msra.gmra.mxu0 %vm326_vm0, %v319_v1  ;;  %s313_s25 = scalar_lea.vmem [#allocation5], %s614_s24  ;;  %s530_s13 = scalar_lea.hbm %s983_s8, %s629_s26 }
  0x1d   : > { %v694_v15 = vpop.eup %693  ;;  %455 = vmatpush.msra.mxu1 %v426_v34  ;;  %633 = vmatpush.msra.mxu3 %v426_v34  ;;  %s531_s17 = sshll.u32 %s313_s25, 4  ;;  %s533_s18 = sshll.u32 %s530_s13, 4  ;;  %s532_s17 = int_to_ptr.vmem [resolvable:$true] %s531_s17  ;;  %s534_s18 = int_to_ptr.hbm [resolvable:$true] %s533_s18 }
  0x1e   : > { %v372_v16 = vmul.f32 32.0, %v694_v15  ;;  %vm376_vm4 = vweird.f32 %v694_v15  ;;  %s743_s20 = sshra.s32 %s534_s18, 4  ;;  %s749_s24 = scalar_lea.hbm %s983_s8, 32  ;;  %s744_s20 = int_to_ptr.hbm [resolvable:$true] %s743_s20 }
  0x1f   : > { %s745_s21 = scalar_lea.hbm %s744_s20, 16  ;;  %p750_p3 = scmp.lt.s32.totalorder %s744_s20, %s983_s8 }
  0x20   : > { %v373_v17 = vsub.f32 1.0, %v372_v16  ;;  %p746_p0 = scmp.ne.s32.totalorder %s744_s20, %s745_s21  ;;  %p751_p4 = scmp.lt.s32.totalorder %s749_s24, %s745_s21 }
  0x22   : > { %v374_v18 = vmul.f32 %v694_v15, %v373_v17  ;;  %p747_p1 = pnand %p746_p0, %p886_p5  ;;  %p752_p7 = por %p751_p4, %p750_p3 }
  0x24   : > { %618 = vmatmul.msk.f32.gmra.mxu0 %vm326_vm0, %v320_v2  ;;  %v375_v19 = vadd.f32 %v694_v15, %v374_v18  ;;  %p748_p2 = pneg %p747_p1 }
  0x26   : > { %v377_v20 = vsel %vm376_vm4, %v694_v15, %v375_v19  ;;  %p753_p8 = pnand %p752_p7, %p748_p2 }
  0x99   : > { %v350_v4 = vpop.f32.mrf.mxu0 }
  0x9a   : > { %v351_v5 = vadd.f32 %v689_v3, %v350_v4 }
  0x9c   : > { %v358_v6 = vmul.f32 0.01, %v351_v5  ;;  %vm356_vm1 = vcmp.gt.f32.partialorder %v351_v5, 0.0 }
  0x9e   : > { %v360_v7 = vsel %vm356_vm1, %v351_v5, %v358_v6  ;;  %v473_v5 = vld [vmem:[%s982_s7] sm:$0xff] }
  0x9f   : > { %v365_v8 = vsel %vm364_vm2, %v360_v7, 0.0  ;;  %497 = vmatpush.msra.mxu2 %v473_v5 }
  0xa0   : > { %366 = vadd.xlane.f32.xlu0 %v365_v8 }
  0xa1   : > { %v353_v9 = vpop.f32.mrf.mxu0 }
  0xa2   : > { %v354_v10 = vadd.f32 %v689_v3, %v353_v9 }
  0xa4   : > { %v359_v11 = vmul.f32 0.01, %v354_v10  ;;  %vm357_vm3 = vcmp.gt.f32.partialorder %v354_v10, 0.0 }
  0xa6   : > { %v361_v12 = vsel %vm357_vm3, %v354_v10, %v359_v11 }
  0xa7   : > { %v368_v13 = vsel %vm364_vm2, %v361_v12, 0.0 }
  0xa8   : > { %369 = vadd.xlane.f32.xlu0 %v368_v13 }
 0x113   : > { %v367_v21 = vpop.xlane.xlu0 %366 }
 0x114   : > { %v378_v22 = vmul.f32 %v377_v20, %v367_v21 }
 0x116   : > { %v380_v23 = vsub.f32 %v360_v7, %v378_v22 }
 0x118   : > { %v382_v24 = vmul.f32 %v380_v23, %v380_v23 }
 0x11a   : > { %v384_v25 = vsel %vm364_vm2, %v382_v24, 0.0 }
 0x11b   : > { %385 = vadd.xlane.f32.xlu1 %v384_v25  ;;  %v370_v26 = vpop.xlane.xlu0 %369 }
 0x11c   : > { %v379_v27 = vmul.f32 %v377_v20, %v370_v26 }
 0x11e   : > { %v381_v28 = vsub.f32 %v361_v12, %v379_v27 }
 0x120   : > { %v383_v29 = vmul.f32 %v381_v28, %v381_v28 }
 0x122   : > { %v387_v30 = vsel %vm364_vm2, %v383_v29, 0.0 }
 0x123   : > { %388 = vadd.xlane.f32.xlu1 %v387_v30 }
 0x18e   : > { %v386_v35 = vpop.xlane.xlu1 %385 }
 0x18f   : > { %v390_v36 = vmul.f32 %v386_v35, %v377_v20 }
 0x191   : > { %v392_v37 = vadd.f32 1e-05, %v390_v36 }
 0x193   : > { %695 = vrsqrt.f32 %v392_v37  ;;  %vm400_vm6 = vweird.f32 %v392_v37 }
 0x196   : > { %v389_v38 = vpop.xlane.xlu1 %388 }
 0x197   : > { %v391_v39 = vmul.f32 %v389_v38, %v377_v20 }
 0x199   : > { %v696_v40 = vpop.eup %695  ;;  %v393_v41 = vadd.f32 1e-05, %v391_v39 }
 0x19a   : > { %v395_v42 = vmul.f32 %v696_v40, %v392_v37  ;;  %vm401_vm5 = vweird.f32 %v696_v40 }
 0x19b   : > { %697 = vrsqrt.f32 %v393_v41  ;;  %vm402_vm7 = vmor %vm400_vm6, %vm401_vm5  ;;  %vm410_vm9 = vweird.f32 %v393_v41 }
 0x19c   : > { %v396_v43 = vmul.f32 %v696_v40, %v395_v42 }
 0x19e   : > { %v397_v44 = vmul.f32 0.5, %v396_v43 }
 0x1a0   : > { %v398_v45 = vsub.f32 1.5, %v397_v44 }
 0x1a1   : > { %v698_v46 = vpop.eup %697 }
 0x1a2   : > { %v399_v47 = vmul.f32 %v696_v40, %v398_v45  ;;  %v405_v48 = vmul.f32 %v698_v46, %v393_v41  ;;  %vm411_vm8 = vweird.f32 %v698_v46 }
 0x1a3   : > { %vm412_vm10 = vmor %vm410_vm9, %vm411_vm8 }
 0x1a4   : > { %v403_v50 = vsel %vm402_vm7, %v696_v40, %v399_v47  ;;  %v406_v51 = vmul.f32 %v698_v46, %v405_v48 }
 0x1a5   : > { %v414_v52 = vmul.f32 %v403_v50, %v380_v23 }
 0x1a6   : > { %v407_v54 = vmul.f32 0.5, %v406_v51 }
 0x1a7   : > { %v419_v55 = vmul.f32 %v690_v49, %v414_v52 }
 0x1a8   : > { %v408_v56 = vsub.f32 1.5, %v407_v54 }
 0x1a9   : > { %v424_v57 = vadd.f32 %v691_v53, %v419_v55 }
 0x1aa   : > { %v409_v58 = vmul.f32 %v698_v46, %v408_v56 }
 0x1ab   : > { %619 = vmatmul.msk.f32.vlgmr.msra.gmra.mxu1 %vm364_vm2, %v424_v57 }
 0x1ac   : > { %v413_v59 = vsel %vm412_vm10, %v698_v46, %v409_v58 }
 0x1ad   : > { %v415_v60 = vmul.f32 %v413_v59, %v381_v28 }
 0x1af   : > { %v420_v61 = vmul.f32 %v690_v49, %v415_v60 }
 0x1b1   : > { %v425_v62 = vadd.f32 %v691_v53, %v420_v61 }
 0x1b3   : > { %620 = vmatmul.msk.f32.vlgmr.msra.gmra.mxu3 %vm364_vm2, %v425_v62 }
 0x228   : > { %v457_v1 = vpop.f32.mrf.mxu1 }
 0x229   : > { %v458_v2 = vadd.f32 %v692_v0, %v457_v1 }
 0x22b   : > { %465 = vrot.lane.b32.xlu2 %v458_v2, %s799_s19 }
 0x236   : > { %v460_v3 = vpop.f32.mrf.mxu3 }
 0x237   : > { %v461_v4 = vadd.f32 %v692_v0, %v460_v3 }
 0x239   : > { %467 = vrot.lane.b32.xlu2 %v461_v4, %s799_s19  ;;  %s519_s19 = scalar_lea.sflag [#allocation4], %s311_s23 }
 0x285   : > { %v466_v6 = vpop.permute.xlu2 %465 }
 0x286   : > { %v471_v7 = vsub.f32 %v458_v2, %v466_v6 }
 0x288   : > { %621 = vmatmul.msk.f32.vlgmr.msra.gmra.mxu2 %vm475_vm11, %v471_v7 }
 0x293   : > { %v468_v8 = vpop.permute.xlu2 %467 }
 0x294   : > { %v472_v9 = vsub.f32 %v461_v4, %v468_v8 }
 0x296   : > { %622 = vmatmul.msk.f32.gmra.mxu2 %vm475_vm11, %v472_v9 }
 0x30b   : > { %v499_v10 = vpop.f32.mrf.mxu2 }
 0x30c   : > { %507 = vrot.lane.b32.xlu0 %v499_v10, %s800_s22 }
 0x319   : > { %v502_v11 = vpop.f32.mrf.mxu2 }
 0x31a   : > { %509 = vrot.lane.b32.xlu1 %v502_v11, %s800_s22 }
 0x37e   : > { %v508_v12 = vpop.permute.xlu0 %507 }
 0x37f   : > { %v513_v13 = vsel %vm364_vm2, %v458_v2, %v508_v12 }
 0x380   : > { %516 = vst.msk [vmem:[%s313_s25] sm:$0xff] %vm515_vm12, %v513_v13 }
 0x38c   : > { %v510_v14 = vpop.permute.xlu1 %509 }
 0x38d   : > { %v514_v15 = vsel %vm364_vm2, %v461_v4, %v510_v14 }
 0x38e   : > { %517 = vst.msk [vmem:[%s313_s25 + $0x8] sm:$0xff] %vm515_vm12, %v514_v15 }
 0x38f   : > { %756 = shalt.err (!%p753_p8)
}
 0x390   : > { %s801_s23 = smov 128   ;;  %s802_s25 = smov 8  }
 0x391   : > { %638 = dma.vmem_to_hbm [thread:$0]  (%p886_p5), %s532_s17, 256, %s534_s18, %s519_s19, %s801_s23, %s801_s23, %s802_s25  }
 0x392 PF: > { %p650_p9 = scmp.ge.s32.totalorder %s795_s30, 2  ;;  %s548_s12 = sand.u32 1, %s783_s27  }
 0x393   : > { %s549_s13 = scalar_lea.sflag [#allocation4], %s548_s12 }
 0x394   : > { %p645_p10 = pnand %p650_p9, %p890_p6 }
 0x396   : > { %p646_p11 = pneg %p645_p10 }
 0x398   : > { %778 = dma.done.wait (%p646_p11), %s549_s13, 256  }
 0x399   : > { %780 = vsyncadd (%p646_p11), %s549_s13, 4294967040  ;;  %p19_p12 = scmp.ge.s32.totalorder %s873_s11, 4   ;;  %s986_s27 = smov %s787_s28 }
 0x39a   : > { %s987_s28 = smov %s791_s29  ;;  %s988_s29 = smov %s884_s14 }
 0x39b   : > { %s989_s30 = smov %s873_s11  ;;  %21 = sbr.rel (!%p19_p12) target bundleno = 4 (0x4), region = 92 }
 0x3a0   :  { %555 = vsyncpa [#allocation3], 1 }
 0x3a1   :  { %557 = vsyncpa [#allocation3 + $0x1], 1 }
 0x3a2   :  { %558 = vsyncpa [#allocation4], 1 }
 0x3a3   :  { %560 = vsyncpa [#allocation4 + $0x1], 1 }

</bundles_post_ra>
